<compile_context>
chip_gen: v7x
topology: tpu7x:2x2x1
jax: 0.10.0
libtpu: 0.0.40
codegen_flags: <defaults>
</compile_context>

<pallas_src>
import functools

import jax
import jax.numpy as jnp
from jax.experimental import pallas as pl


# ----------------------------------------------------------------------------
# Fused forward kernel: RGCN layer1 -> ReLU -> layer2 -> u_dot_v (pos || neg).
# Everything is VMEM-resident; no grid.
# ----------------------------------------------------------------------------
def _fused_forward_kernel(a_ref, x_ref, w1s_ref, w2c_ref, b1_ref, b2_ref,
                          su_ref, sv_ref, o_ref, *, num_rel, out_dim):
    x = x_ref[...]                                                  # (N, Fin)

    # ---- layer 1: h1 = relu( sum_r A_r X W1_r + sum_r b1_r ) --------------
    # Fin < Hid: do (A_r @ X) first (narrow N^2 matmul), then one stacked
    # matmul that applies all W1_r AND performs the relation sum.
    ax = jnp.concatenate(
        [jnp.dot(a_ref[r], x, preferred_element_type=jnp.float32)
         for r in range(num_rel)],
        axis=1)                                                     # (N, R*Fin)
    h1 = jnp.dot(ax, w1s_ref[...], preferred_element_type=jnp.float32)  # (N, Hid)
    h1 = jnp.maximum(h1 + b1_ref[...], 0.0)

    # ---- layer 2: h2 = sum_r A_r (h1 W2_r) + sum_r b2_r --------------------
    # Hid > Out: one wide batched feature transform, then per-relation
    # A_r @ slice accumulated in registers.
    hw = jnp.dot(h1, w2c_ref[...], preferred_element_type=jnp.float32)  # (N, R*Out)
    h2 = jnp.dot(a_ref[0], hw[:, :out_dim], preferred_element_type=jnp.float32)
    for r in range(1, num_rel):
        h2 = h2 + jnp.dot(a_ref[r], hw[:, r * out_dim:(r + 1) * out_dim],
                          preferred_element_type=jnp.float32)
    h2 = h2 + b2_ref[...]                                           # (N, Out)

    # ---- HeteroDotProductPredictor (u_dot_v) on pos||neg edges -------------
    # One-hot selection matrices gather endpoint features on the MXU; the
    # merged result is stored as a single lane-dense row (pos first, then neg).
    hu = jnp.dot(su_ref[...], h2, preferred_element_type=jnp.float32)   # (2E, Out)
    hv = jnp.dot(sv_ref[...], h2, preferred_element_type=jnp.float32)   # (2E, Out)
    scores = jnp.sum(hu * hv, axis=-1)                              # (2E,)
    o_ref[...] = scores.reshape(1, -1)


@jax.jit
def fused_forward(adj, x, w1, b1, w2, b2, pos_src, pos_dst, neg_src, neg_dst):
    """adj: [R,N,N] normalized dense adjacency (dst x src); x: [N,Fin];
       w1: [R,Fin,Hid]; b1: [R,1,Hid]; w2: [R,Hid,Out]; b2: [R,1,Out];
       edge index arrays: [E] int32.  Returns (pos [E,1], neg [E,1])."""
    R, N, _ = adj.shape
    Fin = x.shape[1]
    Hid = w1.shape[2]
    Out = w2.shape[2]
    Ep = pos_src.shape[0]
    En = neg_src.shape[0]
    Et = Ep + En

    # glue-side layout prep (cheap; compiled together with the single call)
    w1_stack = w1.reshape(R * Fin, Hid)                          # vstack_r(W1_r)
    w2_cat = jnp.transpose(w2, (1, 0, 2)).reshape(Hid, R * Out)  # hstack_r(W2_r)
    b1_sum = b1[:, 0, :].sum(axis=0, keepdims=True)              # (1, Hid)
    b2_sum = b2[:, 0, :].sum(axis=0, keepdims=True)              # (1, Out)
    s_u = jnp.concatenate([jax.nn.one_hot(pos_src, N, dtype=jnp.float32),
                           jax.nn.one_hot(neg_src, N, dtype=jnp.float32)], axis=0)
    s_v = jnp.concatenate([jax.nn.one_hot(pos_dst, N, dtype=jnp.float32),
                           jax.nn.one_hot(neg_dst, N, dtype=jnp.float32)], axis=0)

    kernel = functools.partial(_fused_forward_kernel, num_rel=R, out_dim=Out)
    scores = pl.pallas_call(
        kernel,
        out_shape=jax.ShapeDtypeStruct((1, Et), jnp.float32),
        in_specs=[
            pl.BlockSpec((R, N, N), lambda: (0, 0, 0)),
            pl.BlockSpec((N, Fin), lambda: (0, 0)),
            pl.BlockSpec((R * Fin, Hid), lambda: (0, 0)),
            pl.BlockSpec((Hid, R * Out), lambda: (0, 0)),
            pl.BlockSpec((1, Hid), lambda: (0, 0)),
            pl.BlockSpec((1, Out), lambda: (0, 0)),
            pl.BlockSpec((Et, N), lambda: (0, 0)),
            pl.BlockSpec((Et, N), lambda: (0, 0)),
        ],
        out_specs=pl.BlockSpec((1, Et), lambda: (0, 0)),
        # TODO(synk): for large graphs, add a ("parallel","arbitrary") grid over
        # dst-row tiles of A (uses v7x's 2nd TensorCore, bounds the adjacency
        # block for 64 MiB VMEM) and cast A / intermediates to bf16 for the MXU.
    )(adj, x, w1_stack, w2_cat, b1_sum, b2_sum, s_u, s_v)

    pos = scores[0, :Ep].reshape(Ep, 1)   # dgl u_dot_v returns [E, 1]
    neg = scores[0, Ep:].reshape(En, 1)
    return pos, neg


# ----------------------------------------------------------------------------
# Glue: graph -> dense normalized adjacency (GraphConv norm='both').
# ----------------------------------------------------------------------------
def build_norm_adj(src, dst, num_nodes):
    a = jnp.zeros((num_nodes, num_nodes), jnp.float32).at[dst, src].add(1.0)
    out_deg = a.sum(axis=0)  # out-degree of src nodes
    in_deg = a.sum(axis=1)   # in-degree of dst nodes
    out_norm = jnp.where(out_deg > 0, 1.0 / jnp.sqrt(out_deg), 0.0)
    in_norm = jnp.where(in_deg > 0, 1.0 / jnp.sqrt(in_deg), 0.0)
    return a * in_norm[:, None] * out_norm[None, :]


# ----------------------------------------------------------------------------
# The Model (RGCN + HeteroDotProductPredictor), parameters built in-script.
# ----------------------------------------------------------------------------
class Model:
    def __init__(self, in_features, hidden_features, out_features, rel_names, key):
        self.rel_names = list(rel_names)
        R = len(self.rel_names)
        k1, k2 = jax.random.split(key, 2)
        lim1 = jnp.sqrt(6.0 / (in_features + hidden_features))   # xavier_uniform
        lim2 = jnp.sqrt(6.0 / (hidden_features + out_features))
        self.W1 = jax.random.uniform(k1, (R, in_features, hidden_features),
                                     jnp.float32, -lim1, lim1)
        self.b1 = jnp.zeros((R, 1, hidden_features), jnp.float32)
        self.W2 = jax.random.uniform(k2, (R, hidden_features, out_features),
                                     jnp.float32, -lim2, lim2)
        self.b2 = jnp.zeros((R, 1, out_features), jnp.float32)

    def __call__(self, g_adj, pos_edges, neg_edges, x):
        return fused_forward(g_adj, x, self.W1, self.b1, self.W2, self.b2,
                             pos_edges[0], pos_edges[1],
                             neg_edges[0], neg_edges[1])


# ----------------------------------------------------------------------------
# Pure-JAX reference (for correctness check only).
# ----------------------------------------------------------------------------
def _reference(model, g_adj, pos_edges, neg_edges, x):
    def layer(adj, h, w, b, relu):
        out = jnp.einsum("rij,jk,rkl->il", adj, h, w) + b[:, 0, :].sum(0)
        return jnp.maximum(out, 0.0) if relu else out
    # sum of per-relation (A_r X W_r + b_r) == einsum + sum of biases
    h = layer(g_adj, x, model.W1, model.b1, True)
    h = layer(g_adj, h, model.W2, model.b2, False)
    pos = jnp.sum(h[pos_edges[0]] * h[pos_edges[1]], axis=-1, keepdims=True)
    neg = jnp.sum(h[neg_edges[0]] * h[neg_edges[1]], axis=-1, keepdims=True)
    return pos, neg


if __name__ == "__main__":
    key = jax.random.PRNGKey(0)
    N = 16              # number of nodes (single node type)
    IN, HID, OUT = 8, 32, 16
    rel_names = ["rel_a", "rel_b", "rel_c"]
    R = len(rel_names)
    E = 24              # edges per relation
    etype_idx = 0       # score the first relation

    keys = jax.random.split(key, 8)
    # synthetic hetero graph: R relations, each with E random edges
    srcs = jax.random.randint(keys[0], (R, E), 0, N, dtype=jnp.int32)
    dsts = jax.random.randint(keys[1], (R, E), 0, N, dtype=jnp.int32)
    g_adj = jnp.stack([build_norm_adj(srcs[r], dsts[r], N) for r in range(R)])

    # positive edges = g's edges of `etype`; negative graph = random pairs
    pos_edges = (srcs[etype_idx], dsts[etype_idx])
    neg_src = jax.random.randint(keys[2], (E,), 0, N, dtype=jnp.int32)
    neg_dst = jax.random.randint(keys[3], (E,), 0, N, dtype=jnp.int32)
    neg_edges = (neg_src, neg_dst)

    # node features
    x = jax.random.normal(keys[4], (N, IN), jnp.float32)

    model = Model(IN, HID, OUT, rel_names, keys[5])

    pos_score, neg_score = model(g_adj, pos_edges, neg_edges, x)
    jax.block_until_ready((pos_score, neg_score))

    ref_pos, ref_neg = _reference(model, g_adj, pos_edges, neg_edges, x)
    assert pos_score.shape == (E, 1) and neg_score.shape == (E, 1)
    assert jnp.allclose(pos_score, ref_pos, atol=1e-4, rtol=1e-4)
    assert jnp.allclose(neg_score, ref_neg, atol=1e-4, rtol=1e-4)

    print("KERNEL_OK")
</pallas_src>

<mosaic_0001>
module attributes {stable_mosaic.version = 11 : i64} {
  func.func @_fused_forward_kernel(%arg0: memref<3x16x16xf32, #tpu.memory_space<vmem>>, %arg1: memref<16x8xf32, #tpu.memory_space<vmem>>, %arg2: memref<24x32xf32, #tpu.memory_space<vmem>>, %arg3: memref<32x48xf32, #tpu.memory_space<vmem>>, %arg4: memref<1x32xf32, #tpu.memory_space<vmem>>, %arg5: memref<1x16xf32, #tpu.memory_space<vmem>>, %arg6: memref<48x16xf32, #tpu.memory_space<vmem>>, %arg7: memref<48x16xf32, #tpu.memory_space<vmem>>, %arg8: memref<1x48xf32, #tpu.memory_space<vmem>>) attributes {dimension_semantics = [], scalar_prefetch = 0 : i64, scratch_operands = 0 : i64, tpu.core_type = #tpu.core_type<tc>} {
    %c0 = arith.constant 0 : index
    %c0_0 = arith.constant 0 : index
    %0 = vector.load %arg1[%c0, %c0_0] : memref<16x8xf32, #tpu.memory_space<vmem>>, vector<16x8xf32>
    %c0_1 = arith.constant 0 : index
    %c0_2 = arith.constant 0 : index
    %c0_3 = arith.constant 0 : index
    %1 = vector.load %arg0[%c0_1, %c0_2, %c0_3] : memref<3x16x16xf32, #tpu.memory_space<vmem>>, vector<1x16x16xf32>
    %2 = vector.shape_cast %1 : vector<1x16x16xf32> to vector<16x16xf32>
    %cst = arith.constant dense<0.000000e+00> : vector<16x8xf32>
    %3 = tpu.matmul %2, %0, %cst {dimension_numbers = #tpu.dot_dimension_numbers<[1], [0], [0], [1], [0, 0, 1, 1], [], []>} : vector<16x16xf32>, vector<16x8xf32>, vector<16x8xf32> -> vector<16x8xf32>
    %c1 = arith.constant 1 : index
    %c0_4 = arith.constant 0 : index
    %c0_5 = arith.constant 0 : index
    %4 = vector.load %arg0[%c1, %c0_4, %c0_5] : memref<3x16x16xf32, #tpu.memory_space<vmem>>, vector<1x16x16xf32>
    %5 = vector.shape_cast %4 : vector<1x16x16xf32> to vector<16x16xf32>
    %cst_6 = arith.constant dense<0.000000e+00> : vector<16x8xf32>
    %6 = tpu.matmul %5, %0, %cst_6 {dimension_numbers = #tpu.dot_dimension_numbers<[1], [0], [0], [1], [0, 0, 1, 1], [], []>} : vector<16x16xf32>, vector<16x8xf32>, vector<16x8xf32> -> vector<16x8xf32>
    %c2 = arith.constant 2 : index
    %c0_7 = arith.constant 0 : index
    %c0_8 = arith.constant 0 : index
    %7 = vector.load %arg0[%c2, %c0_7, %c0_8] : memref<3x16x16xf32, #tpu.memory_space<vmem>>, vector<1x16x16xf32>
    %8 = vector.shape_cast %7 : vector<1x16x16xf32> to vector<16x16xf32>
    %cst_9 = arith.constant dense<0.000000e+00> : vector<16x8xf32>
    %9 = tpu.matmul %8, %0, %cst_9 {dimension_numbers = #tpu.dot_dimension_numbers<[1], [0], [0], [1], [0, 0, 1, 1], [], []>} : vector<16x16xf32>, vector<16x8xf32>, vector<16x8xf32> -> vector<16x8xf32>
    %10 = tpu.concatenate %3, %6, %9 in 1 : vector<16x8xf32>, vector<16x8xf32>, vector<16x8xf32> -> vector<16x24xf32>
    %c0_10 = arith.constant 0 : index
    %c0_11 = arith.constant 0 : index
    %11 = vector.load %arg2[%c0_10, %c0_11] : memref<24x32xf32, #tpu.memory_space<vmem>>, vector<24x32xf32>
    %cst_12 = arith.constant dense<0.000000e+00> : vector<16x32xf32>
    %12 = tpu.matmul %10, %11, %cst_12 {dimension_numbers = #tpu.dot_dimension_numbers<[1], [0], [0], [1], [0, 0, 1, 1], [], []>} : vector<16x24xf32>, vector<24x32xf32>, vector<16x32xf32> -> vector<16x32xf32>
    %c0_13 = arith.constant 0 : index
    %c0_14 = arith.constant 0 : index
    %13 = vector.load %arg4[%c0_13, %c0_14] : memref<1x32xf32, #tpu.memory_space<vmem>>, vector<1x32xf32>
    %14 = vector.broadcast %13 : vector<1x32xf32> to vector<16x32xf32>
    %15 = arith.addf %12, %14 : vector<16x32xf32>
    %cst_15 = arith.constant 0.000000e+00 : f32
    %16 = vector.broadcast %cst_15 : f32 to vector<16x32xf32>
    %17 = arith.maximumf %15, %16 : vector<16x32xf32>
    %c0_16 = arith.constant 0 : index
    %c0_17 = arith.constant 0 : index
    %18 = vector.load %arg3[%c0_16, %c0_17] : memref<32x48xf32, #tpu.memory_space<vmem>>, vector<32x48xf32>
    %cst_18 = arith.constant dense<0.000000e+00> : vector<16x48xf32>
    %19 = tpu.matmul %17, %18, %cst_18 {dimension_numbers = #tpu.dot_dimension_numbers<[1], [0], [0], [1], [0, 0, 1, 1], [], []>} : vector<16x32xf32>, vector<32x48xf32>, vector<16x48xf32> -> vector<16x48xf32>
    %c0_19 = arith.constant 0 : index
    %c0_20 = arith.constant 0 : index
    %c0_21 = arith.constant 0 : index
    %20 = vector.load %arg0[%c0_19, %c0_20, %c0_21] : memref<3x16x16xf32, #tpu.memory_space<vmem>>, vector<1x16x16xf32>
    %21 = vector.shape_cast %20 : vector<1x16x16xf32> to vector<16x16xf32>
    %22 = vector.extract_strided_slice %19 {offsets = [0, 0], sizes = [16, 16], strides = [1, 1]} : vector<16x48xf32> to vector<16x16xf32>
    %cst_22 = arith.constant dense<0.000000e+00> : vector<16x16xf32>
    %23 = tpu.matmul %21, %22, %cst_22 {dimension_numbers = #tpu.dot_dimension_numbers<[1], [0], [0], [1], [0, 0, 1, 1], [], []>} : vector<16x16xf32>, vector<16x16xf32>, vector<16x16xf32> -> vector<16x16xf32>
    %c1_23 = arith.constant 1 : index
    %c0_24 = arith.constant 0 : index
    %c0_25 = arith.constant 0 : index
    %24 = vector.load %arg0[%c1_23, %c0_24, %c0_25] : memref<3x16x16xf32, #tpu.memory_space<vmem>>, vector<1x16x16xf32>
    %25 = vector.shape_cast %24 : vector<1x16x16xf32> to vector<16x16xf32>
    %26 = vector.extract_strided_slice %19 {offsets = [0, 16], sizes = [16, 16], strides = [1, 1]} : vector<16x48xf32> to vector<16x16xf32>
    %cst_26 = arith.constant dense<0.000000e+00> : vector<16x16xf32>
    %27 = tpu.matmul %25, %26, %cst_26 {dimension_numbers = #tpu.dot_dimension_numbers<[1], [0], [0], [1], [0, 0, 1, 1], [], []>} : vector<16x16xf32>, vector<16x16xf32>, vector<16x16xf32> -> vector<16x16xf32>
    %28 = arith.addf %23, %27 : vector<16x16xf32>
    %c2_27 = arith.constant 2 : index
    %c0_28 = arith.constant 0 : index
    %c0_29 = arith.constant 0 : index
    %29 = vector.load %arg0[%c2_27, %c0_28, %c0_29] : memref<3x16x16xf32, #tpu.memory_space<vmem>>, vector<1x16x16xf32>
    %30 = vector.shape_cast %29 : vector<1x16x16xf32> to vector<16x16xf32>
    %31 = vector.extract_strided_slice %19 {offsets = [0, 32], sizes = [16, 16], strides = [1, 1]} : vector<16x48xf32> to vector<16x16xf32>
    %cst_30 = arith.constant dense<0.000000e+00> : vector<16x16xf32>
    %32 = tpu.matmul %30, %31, %cst_30 {dimension_numbers = #tpu.dot_dimension_numbers<[1], [0], [0], [1], [0, 0, 1, 1], [], []>} : vector<16x16xf32>, vector<16x16xf32>, vector<16x16xf32> -> vector<16x16xf32>
    %33 = arith.addf %28, %32 : vector<16x16xf32>
    %c0_31 = arith.constant 0 : index
    %c0_32 = arith.constant 0 : index
    %34 = vector.load %arg5[%c0_31, %c0_32] : memref<1x16xf32, #tpu.memory_space<vmem>>, vector<1x16xf32>
    %35 = vector.broadcast %34 : vector<1x16xf32> to vector<16x16xf32>
    %36 = arith.addf %33, %35 : vector<16x16xf32>
    %c0_33 = arith.constant 0 : index
    %c0_34 = arith.constant 0 : index
    %37 = vector.load %arg6[%c0_33, %c0_34] : memref<48x16xf32, #tpu.memory_space<vmem>>, vector<48x16xf32>
    %cst_35 = arith.constant dense<0.000000e+00> : vector<48x16xf32>
    %38 = tpu.matmul %37, %36, %cst_35 {dimension_numbers = #tpu.dot_dimension_numbers<[1], [0], [0], [1], [0, 0, 1, 1], [], []>} : vector<48x16xf32>, vector<16x16xf32>, vector<48x16xf32> -> vector<48x16xf32>
    %c0_36 = arith.constant 0 : index
    %c0_37 = arith.constant 0 : index
    %39 = vector.load %arg7[%c0_36, %c0_37] : memref<48x16xf32, #tpu.memory_space<vmem>>, vector<48x16xf32>
    %cst_38 = arith.constant dense<0.000000e+00> : vector<48x16xf32>
    %40 = tpu.matmul %39, %36, %cst_38 {dimension_numbers = #tpu.dot_dimension_numbers<[1], [0], [0], [1], [0, 0, 1, 1], [], []>} : vector<48x16xf32>, vector<16x16xf32>, vector<48x16xf32> -> vector<48x16xf32>
    %41 = arith.mulf %38, %40 : vector<48x16xf32>
    %cst_39 = arith.constant dense<0.000000e+00> : vector<48xf32>
    %42 = vector.multi_reduction <add>, %41, %cst_39 [1] : vector<48x16xf32> to vector<48xf32>
    %43 = vector.shape_cast %42 : vector<48xf32> to vector<1x48xf32>
    %c0_40 = arith.constant 0 : index
    %c0_41 = arith.constant 0 : index
    %44 = vector.load %arg8[%c0_40, %c0_41] : memref<1x48xf32, #tpu.memory_space<vmem>>, vector<1x48xf32>
    tpu.vector_store %arg8[%c0_40, %c0_41], %43 {strides = array<i32>} : memref<1x48xf32, #tpu.memory_space<vmem>>, vector<1x48xf32>,
    return
  }
}

</mosaic_0001>

<bundles_post_ra>
// kernel: fused_forward.1
= control target key start
LH: loop header
LB: loop body
LE: loop exit
PB: predicated region body
PF: predicated region fallthrough
CT: control target
= control target key end

     0   :  { %vm33_vm0 = vcmask 130048   ;;  %s1285_s29 = smov 8   ;;  %vm299_vm1 = vcmask 64512   ;;  %vm314_vm2 = vcmask 195584   ;;  %vm402_vm3 = vcmask 261120   ;;  %s1288_s14 = smov 112   ;;  %s1476_s1 = inlined_call_operand.vmem [shape: f32[16,8], index: 1, kind: input, shape index: {}]   ;;  %s1477_s0 = inlined_call_operand.vmem [shape: f32[3,16,16], index: 0, kind: input, shape index: {}]   ;;  %s1478_s2 = inlined_call_operand.vmem [shape: f32[24,32], index: 2, kind: input, shape index: {}]   ;;  %s1479_s3 = inlined_call_operand.vmem [shape: f32[32,48], index: 3, kind: input, shape index: {}]   ;;  %s1480_s4 = inlined_call_operand.vmem [shape: f32[1,32], index: 4, kind: input, shape index: {}]   ;;  %s1481_s6 = inlined_call_operand.vmem [shape: f32[48,16], index: 6, kind: input, shape index: {}]   ;;  %s1482_s7 = inlined_call_operand.vmem [shape: f32[48,16], index: 7, kind: input, shape index: {}]   ;;  %s1483_s5 = inlined_call_operand.vmem [shape: f32[1,16], index: 5, kind: input, shape index: {}]   ;;  %s1484_s8 = inlined_call_operand.vmem [shape: f32[1,48], index: 8, kind: output, shape index: {}]  }
   0x1   :  { %v29_v0 = vld [vmem:[%s1476_s1] sm:$0xff]  ;;  %v30_v1 = vld [vmem:[%s1476_s1 + $0x8] sm:$0xff]  ;;  %v1052_v5 = vld [vmem:[%s1477_s0 + $0x10] sm:$0xff]  ;;  %vm1013_vm4 = vcmask 130112   ;;  %vm1020_vm5 = vcmask 195712   ;;  %vm1027_vm6 = vcmask 261312  }
   0x2   :  { %v1343_v2 = vld [vmem:[%s1477_s0] sm:$0xff]  ;;  %v1223_v3 = vpack.c.bf16 %v30_v1, %v29_v0  ;;  %v1350_v4 = vld [vmem:[%s1477_s0 + $0x8] sm:$0xff]  ;;  %v1361_v6 = vld [vmem:[%s1477_s0 + $0x18] sm:$0xff]  ;;  %vm1034_vm7 = vcmask 326912   ;;  %vm1041_vm8 = vcmask 392512   ;;  %vm1044_vm9 = vcmask 385024  }
   0x3   :  { %1139 = vmatprep.mubr.msk.f32.mxu0 %vm33_vm0, %v1343_v2  ;;  %v1366_v7 = vld [vmem:[%s1477_s0 + $0x20] sm:$0xff]  ;;  %v1375_v8 = vld [vmem:[%s1477_s0 + $0x28] sm:$0xff]  ;;  %v306_v12 = vld [vmem:[%s1478_s2 + $0x10] sm:$0xff] }
   0x4   :  { %1224 = vmatprep.subr.bf16.mxu0 %v1223_v3  ;;  %v304_v9 = vld [vmem:[%s1478_s2] sm:$0xff]  ;;  %v305_v10 = vld [vmem:[%s1478_s2 + $0x8] sm:$0xff]  ;;  %s1286_s2 = smov 16   ;;  %v400_v30 = vld [vmem:[%s1479_s3 + $0x10] sm:$0xff] }
   0x5   :  { %1226 = vmatpush3.bf16.msra.mxu0 %v1223_v3  ;;  %v1235_v11 = vpack.c.bf16 %v305_v10, %v304_v9  ;;  %v398_v15 = vld [vmem:[%s1479_s3] sm:$0xff]  ;;  %v399_v16 = vld [vmem:[%s1479_s3 + $0x8] sm:$0xff]  ;;  %v401_v31 = vld [vmem:[%s1479_s3 + $0x18] sm:$0xff]  ;;  %s1287_s3 = smov 96  }
   0x6   :  { %1228 = vmatprep.subr.bf16.mxu0 %v1223_v3  ;;  %v1239_v18 = vpack.c.bf16 %v399_v16, %v398_v15  ;;  %v1243_v32 = vpack.c.bf16 %v401_v31, %v400_v30  ;;  %v1060_v33 = vld [vmem:[%s1480_s4] ss:$0 sm:$0xff]  ;;  %v735_v60 = vld [vmem:[%s1481_s6 + $0x8] sm:$0xff]  ;;  %v736_v62 = vld [vmem:[%s1481_s6 + $0x10] sm:$0xff]  ;;  %v1002_v30 = vlaneseq }
   0x7   :  { %1236 = vmatprep.subr.bf16.mxu1 %v1235_v11  ;;  %v734_v52 = vld [vmem:[%s1481_s6] sm:$0xff]  ;;  %v854_v61 = vld [vmem:[%s1482_s7 + $0x8] sm:$0xff]  ;;  %v855_v63 = vld [vmem:[%s1482_s7 + $0x10] sm:$0xff] }
   0x8   :  { %1140 = vmatmul.mubr.msk.f32.vlgmr.msra.gmra.mrb[0].mxu0 %vm33_vm0, %v1350_v4  ;;  %1238 = vmatpush3.bf16.msra.mxu1 %v1235_v11  ;;  %v853_v53 = vld [vmem:[%s1482_s7] sm:$0xff]  ;;  %v737_v0 = vld [vmem:[%s1481_s6 + $0x18] sm:$0xff]  ;;  %v1003_v31 = vand.u32 127, %v1002_v30 }
   0x9   :  { %1230 = vmatpush3.bf16.msra.mxu0 %v1223_v3  ;;  %1146 = vmatprep.mubr.msk.f32.mxu0 %vm33_vm0, %v1052_v5  ;;  %v1071_v54 = vld [vmem:[%s1483_s5] ss:$0 sm:$0xff]  ;;  %v856_v1 = vld [vmem:[%s1482_s7 + $0x18] sm:$0xff] }
   0xa   :  { %1232 = vmatprep.subr.bf16.mxu0 %v1223_v3  ;;  %1160 = vmatprep.subr.mxu1 %v306_v12 }
   0xc   :  { %1147 = vmatmul.mubr.msk.f32.vlgmr.msra.gmra.mrb[2].mxu0 %vm33_vm0, %v1361_v6  ;;  %1161 = vmatpush3.msra.mxu1 %v306_v12 }
   0xd   :  { %1234 = vmatpush3.bf16.msra.mxu0 %v1223_v3  ;;  %1153 = vmatprep.mubr.msk.f32.mxu0 %vm33_vm0, %v1366_v7  ;;  %v857_v3 = vld [vmem:[%s1482_s7 + $0x20] sm:$0xff] }
   0xe   :  { %1240 = vmatprep.subr.bf16.mxu0 %v1239_v18 }
  0x10   :  { %1154 = vmatmul.mubr.msk.f32.vlgmr.msra.gmra.mrb[4].mxu0 %vm33_vm0, %v1375_v8 }
  0x11   :  { %1242 = vmatpush3.bf16.msra.mxu0 %v1239_v18 }
  0x12   :  { %1244 = vmatprep.subr.bf16.mxu0 %v1243_v32 }
  0x15   :  { %1246 = vmatpush3.bf16.msra.mxu0 %v1243_v32  ;;  %v1005_v32 = vshrl.u32 %v1002_v30, 7 }
  0xdb   :  { %v1141_v13 = vpop.f32.mrb[0].mxu0 }
  0xdc   :  { %v106_v14 = vpop.f32.mrb[1].mxu0 }
  0xdf   :  { %v1148_v17 = vpop.f32.mrb[2].mxu0 }
  0xe0   :  { %v190_v19 = vpop.f32.mrb[3].mxu0 }
  0xe1   :  { %285 = vrot.lane.b32.xlu0 %v190_v19, %s1285_s29 }
  0xe3   :  { %v1155_v20 = vpop.f32.mrb[4].mxu0 }
  0xe4   :  { %v274_v21 = vpop.f32.mrb[5].mxu0 }
  0xe5   :  { %287 = vrot.lane.b32.xlu0 %v1148_v17, %s1285_s29  ;;  %293 = vrot.lane.b32.xlu1 %v274_v21, %s1286_s2 }
  0xe9   :  { %295 = vrot.lane.b32.xlu1 %v1155_v20, %s1286_s2 }
 0x153   :  { %v286_v22 = vpop.permute.xlu0 %285 }
 0x154   :  { %v300_v23 = vsel %vm299_vm1, %v106_v14, %v286_v22 }
 0x157   :  { %v294_v24 = vpop.permute.xlu1 %293  ;;  %v288_v25 = vpop.permute.xlu0 %287 }
 0x158   :  { %v302_v26 = vsel %vm33_vm0, %v300_v23, %v294_v24  ;;  %v301_v27 = vsel %vm299_vm1, %v1141_v13, %v288_v25 }
 0x159   :  { %1162 = vmatprep.mubr.msk.f32.mxu1 %vm314_vm2, %v302_v26 }
 0x15b   :  { %v296_v28 = vpop.permute.xlu1 %295 }
 0x15c   :  { %v303_v29 = vsel %vm33_vm0, %v301_v27, %v296_v28 }
 0x15d   :  { %1163 = vmatmul.mubr.msk.f32.vlgmr.msra.gmra.mrb[0].mxu1 %vm314_vm2, %v303_v29 }
 0x15e   :  { %1180 = vmatprep.mubr.msk.f32.mxu1 %vm33_vm0, %v1052_v5  ;;  %v858_v5 = vld [vmem:[%s1482_s7 + $0x28] sm:$0xff] }
 0x230   :  { %v1164_v34 = vpop.f32.mrb[0].mxu1 }
 0x231   :  { %v393_v35 = vadd.f32 %v1164_v34, %v1060_v33  ;;  %v387_v36 = vpop.f32.mrb[1].mxu1 }
 0x232   :  { %v388_v37 = vadd.f32 %v1060_v33, %v387_v36  ;;  %v1008_v33 = vadd.s32 4294967288, %v1003_v31  ;;  %v1029_v36 = vadd.s32 4294967264, %v1003_v31 }
 0x233   :  { %v397_v39 = vmax.f32 %v393_v35, 0.0  ;;  %v1015_v35 = vadd.s32 4294967280, %v1003_v31 }
 0x234   :  { %v396_v38 = vmax.f32 %v388_v37, 0.0  ;;  %v1011_v37 = vsub.s32 %v1008_v33, %v1005_v32 }
 0x236   :  { %1173 = vmatprep.mubr.msk.f32.mxu0 %vm402_vm3, %v396_v38  ;;  %v1006_v38 = vsub.s32 %v1003_v31, %v1005_v32 }
 0x237   :  { %1174 = vmatmul.mubr.msk.f32.vlgmr.msra.gmra.mrb[6].mxu0 %vm402_vm3, %v397_v39  ;;  %v1022_v39 = vadd.s32 4294967272, %v1003_v31 }
 0x238   :  { %1201 = vmatprep.mubr.msk.f32.mxu0 %vm33_vm0, %v734_v52 }
 0x30a   :  { %v1175_v40 = vpop.f32.mrb[6].mxu0 }
 0x30b   :  { %v475_v41 = vpop.f32.mrb[7].mxu0 }
 0x30c   :  { %v1280_v42 = vpack.i.bf16 %v1175_v40, %v475_v41  ;;  %v1251_v43 = vpack.c.bf16 %v1175_v40, %v475_v41 }
 0x30e   :  { %1281 = vrot.lane.b32.xlu1 %v1280_v42, %s1287_s3  ;;  %1276 = vrot.lane.b32.xlu0 %v1280_v42, %s1288_s14  ;;  %v1018_v42 = vsub.s32 %v1015_v35, %v1005_v32 }
 0x380   :  { %v1277_v44 = vpop.permute.xlu0 %1276  ;;  %v1282_v47 = vpop.permute.xlu1 %1281 }
 0x381   :  { %v1279_v45 = vunpack.i.h.bf16 %v1277_v44  ;;  %v1278_v46 = vunpack.i.l.bf16 %v1277_v44  ;;  %v1284_v49 = vunpack.i.h.bf16 %v1282_v47  ;;  %v1283_v50 = vunpack.i.l.bf16 %v1282_v47 }
 0x382   :  { %v1036_v44 = vadd.s32 4294967256, %v1003_v31  ;;  %v1025_v47 = vsub.s32 %v1022_v39, %v1005_v32 }
 0x383   :  { %v1247_v48 = vpack.c.bf16 %v1279_v45, %v1278_v46  ;;  %v1255_v51 = vpack.c.bf16 %v1284_v49, %v1283_v50 }
 0x384   :  { %v1039_v52 = vsub.s32 %v1036_v44, %v1005_v32 }
 0x385   :  { %1248 = vmatprep.subr.bf16.mxu1 %v1247_v48 }
 0x386   :  { %1250 = vmatpush3.bf16.msra.mxu1 %v1247_v48 }
 0x387   :  { %1252 = vmatprep.subr.bf16.mxu1 %v1251_v43 }
 0x389   :  { %1181 = vmatmul.mubr.msk.f32.vlgmr.msra.gmra.mrb[2].mxu1 %vm33_vm0, %v1361_v6 }
 0x38a   :  { %1254 = vmatpush3.bf16.msra.mxu1 %v1251_v43  ;;  %1187 = vmatprep.mubr.msk.f32.mxu1 %vm33_vm0, %v1343_v2  ;;  %v738_v2 = vld [vmem:[%s1481_s6 + $0x20] sm:$0xff]  ;;  %v1032_v43 = vsub.s32 %v1029_v36, %v1005_v32 }
 0x38b   :  { %1256 = vmatprep.subr.bf16.mxu1 %v1255_v51 }
 0x391   :  { %1188 = vmatmul.mubr.msk.f32.vlgmr.msra.gmra.mrb[2].mxu1 %vm33_vm0, %v1350_v4  ;;  %v739_v4 = vld [vmem:[%s1481_s6 + $0x28] sm:$0xff] }
 0x392   :  { %1258 = vmatpush3.bf16.msra.mxu1 %v1255_v51  ;;  %1194 = vmatprep.mubr.msk.f32.mxu1 %vm33_vm0, %v1366_v7 }
 0x399   :  { %1195 = vmatmul.mubr.msk.f32.vlgmr.msra.gmra.mrb[2].mxu1 %vm33_vm0, %v1375_v8 }
 0x39a   :  { %1214 = vmatprep.mubr.msk.f32.mxu1 %vm33_vm0, %v853_v53 }
 0x46c   :  { %v1196_v55 = vpop.f32.mrb[2].mxu1 }
 0x46d   :  { %v733_v56 = vadd.f32 %v1196_v55, %v1071_v54  ;;  %v714_v57 = vpop.f32.mrb[3].mxu1 }
 0x46e   :  { %v732_v58 = vadd.f32 %v1071_v54, %v714_v57 }
 0x470   :  { %v1259_v59 = vpack.c.bf16 %v733_v56, %v732_v58 }
 0x472   :  { %1260 = vmatprep.subr.bf16.mxu0 %v1259_v59  ;;  %1264 = vmatprep.subr.bf16.mxu1 %v1259_v59 }
 0x473   :  { %1262 = vmatpush3.bf16.msra.mxu0 %v1259_v59  ;;  %1266 = vmatpush3.bf16.msra.mxu1 %v1259_v59 }
 0x476   :  { %1202 = vmatmul.mubr.msk.f32.vlgmr.msra.gmra.mrb[8].mxu0 %vm33_vm0, %v735_v60  ;;  %1215 = vmatmul.mubr.msk.f32.vlgmr.msra.gmra.mrb[4].mxu1 %vm33_vm0, %v854_v61 }
 0x477   :  { %1204 = vmatprep.mubr.msk.f32.mxu0 %vm33_vm0, %v736_v62  ;;  %1217 = vmatprep.mubr.msk.f32.mxu1 %vm33_vm0, %v855_v63 }
 0x47a   :  { %1205 = vmatmul.mubr.msk.f32.gmra.mrb[10].mxu0 %vm33_vm0, %v737_v0  ;;  %1218 = vmatmul.mubr.msk.f32.gmra.mrb[6].mxu1 %vm33_vm0, %v856_v1 }
 0x47b   :  { %1207 = vmatprep.mubr.msk.f32.mxu0 %vm33_vm0, %v738_v2  ;;  %1220 = vmatprep.mubr.msk.f32.mxu1 %vm33_vm0, %v857_v3 }
 0x47e   :  { %1208 = vmatmul.mubr.msk.f32.gmra.mrb[12].mxu0 %vm33_vm0, %v739_v4  ;;  %1221 = vmatmul.mubr.msk.f32.gmra.mrb[8].mxu1 %vm33_vm0, %v858_v5 }
 0x549   :  { %v1203_v6 = vpop.f32.mrb[8].mxu0  ;;  %v1216_v7 = vpop.f32.mrb[4].mxu1 }
 0x54a   :  { %v973_v8 = vmul.f32 %v1216_v7, %v1203_v6  ;;  %v824_v9 = vpop.f32.mrb[9].mxu0  ;;  %v943_v10 = vpop.f32.mrb[5].mxu1 }
 0x54b   :  { %v972_v11 = vmul.f32 %v943_v10, %v824_v9 }
 0x54c   :  { %v981_v12 = vsel %vm33_vm0, %v973_v8, 0.0 }
 0x54d   :  { %v1219_v13 = vpop.f32.mrb[6].mxu1  ;;  %982 = vadd.xlane.f32.xlu1 %v981_v12  ;;  %v978_v14 = vsel %vm33_vm0, %v972_v11, 0.0  ;;  %v1206_v15 = vpop.f32.mrb[10].mxu0 }
 0x54e   :  { %979 = vadd.xlane.f32.xlu0 %v978_v14  ;;  %v975_v16 = vmul.f32 %v1219_v13, %v1206_v15  ;;  %v834_v17 = vpop.f32.mrb[11].mxu0  ;;  %v953_v18 = vpop.f32.mrb[7].mxu1 }
 0x54f   :  { %v974_v19 = vmul.f32 %v953_v18, %v834_v17 }
 0x550   :  { %v987_v20 = vsel %vm33_vm0, %v975_v16, 0.0 }
 0x551   :  { %v1209_v21 = vpop.f32.mrb[12].mxu0  ;;  %v1222_v22 = vpop.f32.mrb[8].mxu1  ;;  %v984_v27 = vsel %vm33_vm0, %v974_v19, 0.0 }
 0x552   :  { %988 = vadd.xlane.f32.xlu0 %v987_v20  ;;  %v977_v23 = vmul.f32 %v1222_v22, %v1209_v21  ;;  %v844_v24 = vpop.f32.mrb[13].mxu0  ;;  %v963_v25 = vpop.f32.mrb[9].mxu1 }
 0x553   :  { %v976_v26 = vmul.f32 %v963_v25, %v844_v24 }
 0x554   :  { %v993_v29 = vsel %vm33_vm0, %v977_v23, 0.0 }
 0x555   :  { %v990_v28 = vsel %vm33_vm0, %v976_v26, 0.0 }
 0x556   :  { %985 = vadd.xlane.f32.xlu0 %v984_v27  ;;  %991 = vadd.xlane.f32.xlu1 %v990_v28 }
 0x55a   :  { %994 = vadd.xlane.f32.xlu0 %v993_v29 }
 0x5da   :  { %v983_v40 = vpop.xlane.xlu1 %982 }
 0x5db   :  { %v980_v34 = vpop.xlane.xlu0 %979  ;;  %v1012_v45 = vrot.slane %v983_v40, %v1011_v37 }
 0x5dc   :  { %v1007_v46 = vrot.slane %v980_v34, %v1006_v38 }
 0x5de   :  { %v1014_v53 = vsel %vm1013_vm4, %v1012_v45, %v1007_v46 }
 0x5df   :  { %v989_v41 = vpop.xlane.xlu0 %988 }
 0x5e0   :  { %v1026_v54 = vrot.slane %v989_v41, %v1025_v47 }
 0x5e3   :  { %v986_v48 = vpop.xlane.xlu0 %985  ;;  %v992_v49 = vpop.xlane.xlu1 %991 }
 0x5e4   :  { %v1019_v50 = vrot.slane %v986_v48, %v1018_v42  ;;  %v1033_v51 = vrot.slane %v992_v49, %v1032_v43 }
 0x5e6   :  { %v1021_v55 = vsel %vm1020_vm5, %v1019_v50, %v1014_v53 }
 0x5e7   :  { %v1028_v56 = vsel %vm1027_vm6, %v1026_v54, %v1021_v55  ;;  %v995_v57 = vpop.xlane.xlu0 %994 }
 0x5e8   :  { %v1035_v58 = vsel %vm1034_vm7, %v1033_v51, %v1028_v56  ;;  %v1040_v59 = vrot.slane %v995_v57, %v1039_v52 }
 0x5ea   :  { %v1042_v60 = vsel %vm1041_vm8, %v1040_v59, %v1035_v58 }
 0x5eb   :  { %1045 = vst.msk [vmem:[%s1484_s8] sm:$0x1] %vm1044_vm9, %v1042_v60 }

</bundles_post_ra>
